<compile_context>
chip_gen: v7x
topology: tpu7x:2x2x1
jax: 0.10.0
libtpu: 0.0.40
codegen_flags: <defaults>
</compile_context>

<pallas_src>
import math
import jax
import jax.numpy as jnp
from jax import lax
from jax.experimental import pallas as pl
from jax.experimental.pallas import tpu as pltpu


# -----------------------------------------------------------------------------
# Reference-only spline glue (plain JAX): PFNN Catmull-Rom weights scattered to
# the 4 control layers.  The kernel recomputes this on the VPU.
# -----------------------------------------------------------------------------
def spline_multipliers(phase):
    """phase: (B,) in [0, 2*pi). Returns (B, 4) multipliers w0..w3 such that the
    blended output is sum_k w_k * layer_k(x)."""
    t = phase * 4.0 / (2.0 * math.pi)
    w = jnp.mod(t, 1.0)                                  # spline_w(phase)
    pidx = jnp.floor(t).astype(jnp.int32) % 4            # segment index
    c0 = -0.5 * w + w * w - 0.5 * w ** 3                 # -> kn(phase, 0)
    c1 = 1.0 - 2.5 * w * w + 1.5 * w ** 3                # -> kn(phase, 1)
    c2 = 0.5 * w + 2.0 * w * w - 1.5 * w ** 3             # -> kn(phase, 2)
    c3 = -0.5 * w * w + 0.5 * w ** 3                      # -> kn(phase, 3)
    wm = jnp.zeros((phase.shape[0], 4), jnp.float32)
    for j, c in enumerate([c0, c1, c2, c3]):
        idx = (pidx + j - 1) % 4                         # kn(phase, j)
        wm = wm + jax.nn.one_hot(idx, 4, dtype=jnp.float32) * c[:, None]
    return wm


# -----------------------------------------------------------------------------
# Pallas kernel: fused forward pass for one batch tile
#   wm = catmull_rom(phase)                                (VPU, in-kernel)
#   h  = relu( sum_k wm_k * (s @ W1s_k + a @ W1a_k) + wm @ b1 )
#   o  = concat_k(wm_k * h) @ vstack_k(Wo_k) + wm @ bo     (128-lane fused)
#   q  = o @ [wq1 | wq2] + [bq1 | bq2]                     -> (TB, 2)
# -----------------------------------------------------------------------------
def pmlp_critic_kernel(s_ref, a_ref, ph_ref, w1s_ref, w1a_ref, b1_ref,
                       woc_ref, bo_ref, wq_ref, bq_ref, q_ref):
    s = s_ref[...]                          # (TB, Ds)  f32
    a = a_ref[...]                          # (TB, Da)  f32
    ph = ph_ref[...]                        # (TB, 1)   f32
    tb = ph.shape[0]

    # --- Catmull-Rom blend weights computed on the VPU from the phase tile ---
    t = ph * (4.0 / (2.0 * math.pi))
    ft = jnp.floor(t)
    w = t - ft                              # spline_w(phase), in [0, 1)
    pidx = ft.astype(jnp.int32) % 4         # segment index, (TB, 1)
    w2 = w * w
    w3 = w2 * w
    coeffs = (-0.5 * w + w2 - 0.5 * w3,     # kn(phase, 0)
              1.0 - 2.5 * w2 + 1.5 * w3,    # kn(phase, 1)
              0.5 * w + 2.0 * w2 - 1.5 * w3,   # kn(phase, 2)
              -0.5 * w2 + 0.5 * w3)            # kn(phase, 3)
    col = lax.broadcasted_iota(jnp.int32, (tb, 4), 1)
    wm = jnp.zeros((tb, 4), jnp.float32)
    for j, c in enumerate(coeffs):
        tgt = (pidx + (j + 3)) % 4          # == (pidx + j - 1) % 4, kept >= 0
        wm = wm + jnp.where(tgt == col, c, 0.0)

    # --- blended hidden layer: blend on the OUTPUT side (no lane concat) -----
    # 8 tiny matmuls (K = Ds / Da) + one (TB,4)x(4,H) bias blend; MXU has slack.
    h = jnp.dot(wm, b1_ref[...], preferred_element_type=jnp.float32)
    for k in range(4):
        hk = (jnp.dot(s, w1s_ref[k], preferred_element_type=jnp.float32)
              + jnp.dot(a, w1a_ref[k], preferred_element_type=jnp.float32))
        h = h + wm[:, k:k + 1] * hk
    h = jnp.maximum(h, 0.0)                 # (TB, H)

    # --- blended h2o layer: fused single MXU pass (concat is 4*H = 128 lanes) -
    hw = jnp.concatenate([wm[:, k:k + 1] * h for k in range(4)], axis=1)
    o = (jnp.dot(hw, woc_ref[...], preferred_element_type=jnp.float32)
         + jnp.dot(wm, bo_ref[...], preferred_element_type=jnp.float32))

    # --- fused q1/q2 heads: one (TB, 2) matmul --------------------------------
    q_ref[...] = (jnp.dot(o, wq_ref[...], preferred_element_type=jnp.float32)
                  + bq_ref[...]).astype(q_ref.dtype)


def pmlp_critic_forward(state, action, phase, params, *, tile_b=2048):
    state = state.astype(jnp.float32)
    action = action.astype(jnp.float32)
    phase2d = phase.reshape(-1, 1).astype(jnp.float32)   # (B, 1), free reshape

    B, ds = state.shape
    da = action.shape[1]

    w1, b1 = params["w1"], params["b1"]        # (4, Din, H1), (4, H1)
    wo, bo = params["wo"], params["bo"]        # (4, H2, O),   (4, O)
    d_in, H1 = w1.shape[1], w1.shape[2]
    H2, O = wo.shape[1], wo.shape[2]
    assert d_in == ds + da
    # n_layers=1 path: the h2o layer consumes the hidden-layer output directly.
    assert H1 == H2, "h2o input width must equal hidden width on the n_layers=1 path"

    # Split the stacked hidden weights into state-row / action-row blocks so the
    # kernel consumes state and action directly (no concat anywhere).
    w1s = w1[:, :ds, :]                        # (4, Ds, H1)
    w1a = w1[:, ds:, :]                        # (4, Da, H1)
    woc = wo.reshape(4 * H2, O)                # vstack of the 4 (H2, O) mats
    wq = jnp.concatenate([params["wq1"], params["wq2"]], axis=1)   # (O, 2)
    bq = jnp.concatenate([params["bq1"], params["bq2"]], axis=1)   # (1, 2)

    tb = min(tile_b, B)
    grid = (pl.cdiv(B, tb),)

    batch_map = lambda i: (i, 0)               # activation/output tiles stream
    const2 = lambda i: (0, 0)                  # weights stay VMEM-resident
    const3 = lambda i: (0, 0, 0)

    q = pl.pallas_call(
        pmlp_critic_kernel,
        out_shape=jax.ShapeDtypeStruct((B, 2), jnp.float32),
        grid=grid,
        in_specs=[
            pl.BlockSpec((tb, ds), batch_map),         # state
            pl.BlockSpec((tb, da), batch_map),         # action
            pl.BlockSpec((tb, 1), batch_map),          # phase
            pl.BlockSpec((4, ds, H1), const3),         # w1s
            pl.BlockSpec((4, da, H1), const3),         # w1a
            pl.BlockSpec((4, H1), const2),             # b1
            pl.BlockSpec((4 * H2, O), const2),         # woc (fused h2o weight)
            pl.BlockSpec((4, O), const2),              # bo
            pl.BlockSpec((O, 2), const2),              # wq (q1|q2)
            pl.BlockSpec((1, 2), const2),              # bq
        ],
        out_specs=pl.BlockSpec((tb, 2), batch_map),
        compiler_params=pltpu.CompilerParams(
            dimension_semantics=("parallel",),
            # Realistic cap: ~15 MiB working set at tb=2048; 32 MiB leaves
            # headroom on all generations (and is only half of v7x's 64 MiB).
            vmem_limit_bytes=32 << 20,
        ),
    )(state, action, phase2d, w1s, w1a, b1, woc, bo, wq, bq)

    return q[:, 0:1], q[:, 1:2]


# -----------------------------------------------------------------------------
# Deterministic synthetic parameter init (mirrors shapes in __init__)
# -----------------------------------------------------------------------------
def init_params(key, d_in, h1, h2, out):
    ks = jax.random.split(key, 10)
    fan1 = 1.0 / math.sqrt(d_in)          # init_fanin
    fanq = 1.0 / math.sqrt(out)
    w1 = jax.random.uniform(ks[0], (4, d_in, h1), jnp.float32, -fan1, fan1)
    b1 = jax.random.uniform(ks[1], (4, h1), jnp.float32, -fan1, fan1)
    wo = jax.random.uniform(ks[2], (4, h2, out), jnp.float32, -0.003, 0.003)
    bo = jax.random.uniform(ks[3], (4, out), jnp.float32, -0.003, 0.003)
    wq1 = jax.random.uniform(ks[4], (out, 1), jnp.float32, -fanq, fanq)
    bq1 = jax.random.uniform(ks[5], (1, 1), jnp.float32, -fanq, fanq)
    wq2 = jax.random.uniform(ks[6], (out, 1), jnp.float32, -fanq, fanq)
    bq2 = jax.random.uniform(ks[7], (1, 1), jnp.float32, -fanq, fanq)
    return dict(w1=w1, b1=b1, wo=wo, bo=bo,
                wq1=wq1, bq1=bq1, wq2=wq2, bq2=bq2)


# Pure-JAX reference of the same forward (per-k form, mirrors the PyTorch code)
def reference_forward(state, action, phase, params):
    x = jnp.concatenate([state, action], axis=1).astype(jnp.float32)
    wm = spline_multipliers(phase)
    h = jnp.zeros((x.shape[0], params["w1"].shape[2]), jnp.float32)
    for k in range(4):
        h = h + wm[:, k:k + 1] * (x @ params["w1"][k] + params["b1"][k])
    h = jnp.maximum(h, 0.0)
    o = jnp.zeros((x.shape[0], params["wo"].shape[2]), jnp.float32)
    for k in range(4):
        o = o + wm[:, k:k + 1] * (h @ params["wo"][k] + params["bo"][k])
    q1 = o @ params["wq1"] + params["bq1"]
    q2 = o @ params["wq2"] + params["bq2"]
    return q1, q2


if __name__ == "__main__":
    # Small shapes consistent with the module (n_layers=1 default path).
    INPUT_SIZE_STATE = 8
    INPUT_SIZE_ACTION = 4
    HIDDEN = 32          # hidden_sizes=[H, H]; 4 * H == 128 -> lane-dense fused h2o
    OUTPUT_SIZE = 16

    key = jax.random.PRNGKey(0)
    k_w, k_data = jax.random.split(key)
    params = init_params(k_w, INPUT_SIZE_STATE + INPUT_SIZE_ACTION,
                         HIDDEN, HIDDEN, OUTPUT_SIZE)

    ok = True
    # (B, tile_b): single small tile / multi-tile grid with a ragged tail /
    # large-batch default tiling (weights VMEM-resident across the grid).
    for B, tile_b in ((8, 2048), (300, 128), (4096, 2048)):
        k_s, k_a, k_p = jax.random.split(jax.random.fold_in(k_data, B), 3)
        state = jax.random.normal(k_s, (B, INPUT_SIZE_STATE), jnp.float32)
        action = jax.random.normal(k_a, (B, INPUT_SIZE_ACTION), jnp.float32)
        phase = jax.random.uniform(k_p, (B,), jnp.float32, 0.0, 2.0 * math.pi)

        q1, q2 = pmlp_critic_forward(state, action, phase, params, tile_b=tile_b)
        q1 = jax.block_until_ready(q1)
        q2 = jax.block_until_ready(q2)

        r1, r2 = reference_forward(state, action, phase, params)
        ok &= bool(q1.shape == (B, 1) and q2.shape == (B, 1))
        ok &= bool(jnp.allclose(q1, r1, atol=2e-5, rtol=1e-4))
        ok &= bool(jnp.allclose(q2, r2, atol=2e-5, rtol=1e-4))

    if ok:
        print("KERNEL_OK")
    else:
        print("KERNEL_MISMATCH")
</pallas_src>

<mosaic_0001>
module attributes {stable_mosaic.version = 11 : i64} {
  func.func @pmlp_critic_kernel(%arg0: i32, %arg1: memref<8x8xf32, #tpu.memory_space<vmem>>, %arg2: memref<8x4xf32, #tpu.memory_space<vmem>>, %arg3: memref<8x1xf32, #tpu.memory_space<vmem>>, %arg4: memref<4x8x32xf32, #tpu.memory_space<vmem>>, %arg5: memref<4x4x32xf32, #tpu.memory_space<vmem>>, %arg6: memref<4x32xf32, #tpu.memory_space<vmem>>, %arg7: memref<128x16xf32, #tpu.memory_space<vmem>>, %arg8: memref<4x16xf32, #tpu.memory_space<vmem>>, %arg9: memref<16x2xf32, #tpu.memory_space<vmem>>, %arg10: memref<1x2xf32, #tpu.memory_space<vmem>>, %arg11: memref<8x2xf32, #tpu.memory_space<vmem>>) attributes {dimension_semantics = [#tpu.dimension_semantics<parallel>], iteration_bounds = array<i64: 1>, scalar_prefetch = 0 : i64, scratch_operands = 0 : i64, tpu.core_type = #tpu.core_type<tc>, window_params = [{transform_indices = @transform_0, window_bounds = array<i64: 8, 8>}, {transform_indices = @transform_1, window_bounds = array<i64: 8, 4>}, {transform_indices = @transform_2, window_bounds = array<i64: 8, 1>}, {pipeline_mode = #tpu.pipeline_mode<synchronous>, transform_indices = @transform_3, window_bounds = array<i64: 4, 8, 32>}, {pipeline_mode = #tpu.pipeline_mode<synchronous>, transform_indices = @transform_4, window_bounds = array<i64: 4, 4, 32>}, {pipeline_mode = #tpu.pipeline_mode<synchronous>, transform_indices = @transform_5, window_bounds = array<i64: 4, 32>}, {pipeline_mode = #tpu.pipeline_mode<synchronous>, transform_indices = @transform_6, window_bounds = array<i64: 128, 16>}, {pipeline_mode = #tpu.pipeline_mode<synchronous>, transform_indices = @transform_7, window_bounds = array<i64: 4, 16>}, {pipeline_mode = #tpu.pipeline_mode<synchronous>, transform_indices = @transform_8, window_bounds = array<i64: 16, 2>}, {pipeline_mode = #tpu.pipeline_mode<synchronous>, transform_indices = @transform_9, window_bounds = array<i64: 1, 2>}, {transform_indices = @transform_10, window_bounds = array<i64: 8, 2>}]} {
    %c0 = arith.constant 0 : index
    %c0_0 = arith.constant 0 : index
    %0 = vector.load %arg1[%c0, %c0_0] : memref<8x8xf32, #tpu.memory_space<vmem>>, vector<8x8xf32>
    %c0_1 = arith.constant 0 : index
    %c0_2 = arith.constant 0 : index
    %1 = vector.load %arg2[%c0_1, %c0_2] : memref<8x4xf32, #tpu.memory_space<vmem>>, vector<8x4xf32>
    %c0_3 = arith.constant 0 : index
    %c0_4 = arith.constant 0 : index
    %2 = vector.load %arg3[%c0_3, %c0_4] : memref<8x1xf32, #tpu.memory_space<vmem>>, vector<8x1xf32>
    %cst = arith.constant 0.636619746 : f32
    %3 = vector.broadcast %cst : f32 to vector<8x1xf32>
    %4 = arith.mulf %2, %3 : vector<8x1xf32>
    %5 = math.floor %4 : vector<8x1xf32>
    %6 = arith.subf %4, %5 : vector<8x1xf32>
    %7 = arith.fptosi %5 : vector<8x1xf32> to vector<8x1xi32>
    %c4_i32 = arith.constant 4 : i32
    %c0_i32 = arith.constant 0 : i32
    %8 = arith.cmpi eq, %c4_i32, %c0_i32 : i32
    %c1_i32 = arith.constant 1 : i32
    %9 = arith.select %8, %c1_i32, %c4_i32 : i32
    %10 = vector.broadcast %9 : i32 to vector<8x1xi32>
    %11 = arith.remsi %7, %10 : vector<8x1xi32>
    %c0_i32_5 = arith.constant 0 : i32
    %12 = vector.broadcast %c0_i32_5 : i32 to vector<8x1xi32>
    %13 = arith.cmpi ne, %11, %12 : vector<8x1xi32>
    %c0_i32_6 = arith.constant 0 : i32
    %14 = vector.broadcast %c0_i32_6 : i32 to vector<8x1xi32>
    %15 = arith.cmpi slt, %11, %14 : vector<8x1xi32>
    %c0_i32_7 = arith.constant 0 : i32
    %16 = arith.cmpi slt, %9, %c0_i32_7 : i32
    %17 = vector.broadcast %16 : i1 to vector<8x1xi1>
    %18 = vector.broadcast %17 : vector<8x1xi1> to vector<8x1xi1>
    %19 = arith.xori %15, %18 : vector<8x1xi1>
    %20 = arith.andi %19, %13 : vector<8x1xi1>
    %21 = vector.broadcast %9 : i32 to vector<8x1xi32>
    %22 = arith.addi %11, %21 : vector<8x1xi32>
    %23 = arith.select %20, %22, %11 : vector<8x1xi1>, vector<8x1xi32>
    %24 = arith.mulf %6, %6 : vector<8x1xf32>
    %25 = arith.mulf %24, %6 : vector<8x1xf32>
    %cst_8 = arith.constant -5.000000e-01 : f32
    %26 = vector.broadcast %cst_8 : f32 to vector<8x1xf32>
    %27 = arith.mulf %26, %6 : vector<8x1xf32>
    %28 = arith.addf %27, %24 : vector<8x1xf32>
    %cst_9 = arith.constant 5.000000e-01 : f32
    %29 = vector.broadcast %cst_9 : f32 to vector<8x1xf32>
    %30 = arith.mulf %29, %25 : vector<8x1xf32>
    %31 = arith.subf %28, %30 : vector<8x1xf32>
    %cst_10 = arith.constant 2.500000e+00 : f32
    %32 = vector.broadcast %cst_10 : f32 to vector<8x1xf32>
    %33 = arith.mulf %32, %24 : vector<8x1xf32>
    %cst_11 = arith.constant 1.000000e+00 : f32
    %34 = vector.broadcast %cst_11 : f32 to vector<8x1xf32>
    %35 = arith.subf %34, %33 : vector<8x1xf32>
    %cst_12 = arith.constant 1.500000e+00 : f32
    %36 = vector.broadcast %cst_12 : f32 to vector<8x1xf32>
    %37 = arith.mulf %36, %25 : vector<8x1xf32>
    %38 = arith.addf %35, %37 : vector<8x1xf32>
    %cst_13 = arith.constant 5.000000e-01 : f32
    %39 = vector.broadcast %cst_13 : f32 to vector<8x1xf32>
    %40 = arith.mulf %39, %6 : vector<8x1xf32>
    %cst_14 = arith.constant 2.000000e+00 : f32
    %41 = vector.broadcast %cst_14 : f32 to vector<8x1xf32>
    %42 = arith.mulf %41, %24 : vector<8x1xf32>
    %43 = arith.addf %40, %42 : vector<8x1xf32>
    %cst_15 = arith.constant 1.500000e+00 : f32
    %44 = vector.broadcast %cst_15 : f32 to vector<8x1xf32>
    %45 = arith.mulf %44, %25 : vector<8x1xf32>
    %46 = arith.subf %43, %45 : vector<8x1xf32>
    %cst_16 = arith.constant -5.000000e-01 : f32
    %47 = vector.broadcast %cst_16 : f32 to vector<8x1xf32>
    %48 = arith.mulf %47, %24 : vector<8x1xf32>
    %cst_17 = arith.constant 5.000000e-01 : f32
    %49 = vector.broadcast %cst_17 : f32 to vector<8x1xf32>
    %50 = arith.mulf %49, %25 : vector<8x1xf32>
    %51 = arith.addf %48, %50 : vector<8x1xf32>
    %52 = tpu.iota {dimensions = array<i32: 1>} : vector<8x4xi32>
    %cst_18 = arith.constant 0.000000e+00 : f32
    %53 = vector.broadcast %cst_18 : f32 to vector<8x4xf32>
    %c3_i32 = arith.constant 3 : i32
    %54 = vector.broadcast %c3_i32 : i32 to vector<8x1xi32>
    %55 = arith.addi %23, %54 : vector<8x1xi32>
    %c4_i32_19 = arith.constant 4 : i32
    %c0_i32_20 = arith.constant 0 : i32
    %56 = arith.cmpi eq, %c4_i32_19, %c0_i32_20 : i32
    %c1_i32_21 = arith.constant 1 : i32
    %57 = arith.select %56, %c1_i32_21, %c4_i32_19 : i32
    %58 = vector.broadcast %57 : i32 to vector<8x1xi32>
    %59 = arith.remsi %55, %58 : vector<8x1xi32>
    %c0_i32_22 = arith.constant 0 : i32
    %60 = vector.broadcast %c0_i32_22 : i32 to vector<8x1xi32>
    %61 = arith.cmpi ne, %59, %60 : vector<8x1xi32>
    %c0_i32_23 = arith.constant 0 : i32
    %62 = vector.broadcast %c0_i32_23 : i32 to vector<8x1xi32>
    %63 = arith.cmpi slt, %59, %62 : vector<8x1xi32>
    %c0_i32_24 = arith.constant 0 : i32
    %64 = arith.cmpi slt, %57, %c0_i32_24 : i32
    %65 = vector.broadcast %64 : i1 to vector<8x1xi1>
    %66 = vector.broadcast %65 : vector<8x1xi1> to vector<8x1xi1>
    %67 = arith.xori %63, %66 : vector<8x1xi1>
    %68 = arith.andi %67, %61 : vector<8x1xi1>
    %69 = vector.broadcast %57 : i32 to vector<8x1xi32>
    %70 = arith.addi %59, %69 : vector<8x1xi32>
    %71 = arith.select %68, %70, %59 : vector<8x1xi1>, vector<8x1xi32>
    %72 = vector.broadcast %71 : vector<8x1xi32> to vector<8x4xi32>
    %73 = arith.cmpi eq, %72, %52 : vector<8x4xi32>
    %cst_25 = arith.constant 0.000000e+00 : f32
    %74 = vector.shape_cast %31 : vector<8x1xf32> to vector<8x1xf32>
    %75 = vector.broadcast %74 : vector<8x1xf32> to vector<8x4xf32>
    %76 = vector.broadcast %cst_25 : f32 to vector<8x4xf32>
    %77 = arith.select %73, %75, %76 : vector<8x4xi1>, vector<8x4xf32>
    %78 = arith.addf %53, %77 : vector<8x4xf32>
    %c4_i32_26 = arith.constant 4 : i32
    %79 = vector.broadcast %c4_i32_26 : i32 to vector<8x1xi32>
    %80 = arith.addi %23, %79 : vector<8x1xi32>
    %c4_i32_27 = arith.constant 4 : i32
    %c0_i32_28 = arith.constant 0 : i32
    %81 = arith.cmpi eq, %c4_i32_27, %c0_i32_28 : i32
    %c1_i32_29 = arith.constant 1 : i32
    %82 = arith.select %81, %c1_i32_29, %c4_i32_27 : i32
    %83 = vector.broadcast %82 : i32 to vector<8x1xi32>
    %84 = arith.remsi %80, %83 : vector<8x1xi32>
    %c0_i32_30 = arith.constant 0 : i32
    %85 = vector.broadcast %c0_i32_30 : i32 to vector<8x1xi32>
    %86 = arith.cmpi ne, %84, %85 : vector<8x1xi32>
    %c0_i32_31 = arith.constant 0 : i32
    %87 = vector.broadcast %c0_i32_31 : i32 to vector<8x1xi32>
    %88 = arith.cmpi slt, %84, %87 : vector<8x1xi32>
    %c0_i32_32 = arith.constant 0 : i32
    %89 = arith.cmpi slt, %82, %c0_i32_32 : i32
    %90 = vector.broadcast %89 : i1 to vector<8x1xi1>
    %91 = vector.broadcast %90 : vector<8x1xi1> to vector<8x1xi1>
    %92 = arith.xori %88, %91 : vector<8x1xi1>
    %93 = arith.andi %92, %86 : vector<8x1xi1>
    %94 = vector.broadcast %82 : i32 to vector<8x1xi32>
    %95 = arith.addi %84, %94 : vector<8x1xi32>
    %96 = arith.select %93, %95, %84 : vector<8x1xi1>, vector<8x1xi32>
    %97 = vector.broadcast %96 : vector<8x1xi32> to vector<8x4xi32>
    %98 = arith.cmpi eq, %97, %52 : vector<8x4xi32>
    %cst_33 = arith.constant 0.000000e+00 : f32
    %99 = vector.shape_cast %38 : vector<8x1xf32> to vector<8x1xf32>
    %100 = vector.broadcast %99 : vector<8x1xf32> to vector<8x4xf32>
    %101 = vector.broadcast %cst_33 : f32 to vector<8x4xf32>
    %102 = arith.select %98, %100, %101 : vector<8x4xi1>, vector<8x4xf32>
    %103 = arith.addf %78, %102 : vector<8x4xf32>
    %c5_i32 = arith.constant 5 : i32
    %104 = vector.broadcast %c5_i32 : i32 to vector<8x1xi32>
    %105 = arith.addi %23, %104 : vector<8x1xi32>
    %c4_i32_34 = arith.constant 4 : i32
    %c0_i32_35 = arith.constant 0 : i32
    %106 = arith.cmpi eq, %c4_i32_34, %c0_i32_35 : i32
    %c1_i32_36 = arith.constant 1 : i32
    %107 = arith.select %106, %c1_i32_36, %c4_i32_34 : i32
    %108 = vector.broadcast %107 : i32 to vector<8x1xi32>
    %109 = arith.remsi %105, %108 : vector<8x1xi32>
    %c0_i32_37 = arith.constant 0 : i32
    %110 = vector.broadcast %c0_i32_37 : i32 to vector<8x1xi32>
    %111 = arith.cmpi ne, %109, %110 : vector<8x1xi32>
    %c0_i32_38 = arith.constant 0 : i32
    %112 = vector.broadcast %c0_i32_38 : i32 to vector<8x1xi32>
    %113 = arith.cmpi slt, %109, %112 : vector<8x1xi32>
    %c0_i32_39 = arith.constant 0 : i32
    %114 = arith.cmpi slt, %107, %c0_i32_39 : i32
    %115 = vector.broadcast %114 : i1 to vector<8x1xi1>
    %116 = vector.broadcast %115 : vector<8x1xi1> to vector<8x1xi1>
    %117 = arith.xori %113, %116 : vector<8x1xi1>
    %118 = arith.andi %117, %111 : vector<8x1xi1>
    %119 = vector.broadcast %107 : i32 to vector<8x1xi32>
    %120 = arith.addi %109, %119 : vector<8x1xi32>
    %121 = arith.select %118, %120, %109 : vector<8x1xi1>, vector<8x1xi32>
    %122 = vector.broadcast %121 : vector<8x1xi32> to vector<8x4xi32>
    %123 = arith.cmpi eq, %122, %52 : vector<8x4xi32>
    %cst_40 = arith.constant 0.000000e+00 : f32
    %124 = vector.shape_cast %46 : vector<8x1xf32> to vector<8x1xf32>
    %125 = vector.broadcast %124 : vector<8x1xf32> to vector<8x4xf32>
    %126 = vector.broadcast %cst_40 : f32 to vector<8x4xf32>
    %127 = arith.select %123, %125, %126 : vector<8x4xi1>, vector<8x4xf32>
    %128 = arith.addf %103, %127 : vector<8x4xf32>
    %c6_i32 = arith.constant 6 : i32
    %129 = vector.broadcast %c6_i32 : i32 to vector<8x1xi32>
    %130 = arith.addi %23, %129 : vector<8x1xi32>
    %c4_i32_41 = arith.constant 4 : i32
    %c0_i32_42 = arith.constant 0 : i32
    %131 = arith.cmpi eq, %c4_i32_41, %c0_i32_42 : i32
    %c1_i32_43 = arith.constant 1 : i32
    %132 = arith.select %131, %c1_i32_43, %c4_i32_41 : i32
    %133 = vector.broadcast %132 : i32 to vector<8x1xi32>
    %134 = arith.remsi %130, %133 : vector<8x1xi32>
    %c0_i32_44 = arith.constant 0 : i32
    %135 = vector.broadcast %c0_i32_44 : i32 to vector<8x1xi32>
    %136 = arith.cmpi ne, %134, %135 : vector<8x1xi32>
    %c0_i32_45 = arith.constant 0 : i32
    %137 = vector.broadcast %c0_i32_45 : i32 to vector<8x1xi32>
    %138 = arith.cmpi slt, %134, %137 : vector<8x1xi32>
    %c0_i32_46 = arith.constant 0 : i32
    %139 = arith.cmpi slt, %132, %c0_i32_46 : i32
    %140 = vector.broadcast %139 : i1 to vector<8x1xi1>
    %141 = vector.broadcast %140 : vector<8x1xi1> to vector<8x1xi1>
    %142 = arith.xori %138, %141 : vector<8x1xi1>
    %143 = arith.andi %142, %136 : vector<8x1xi1>
    %144 = vector.broadcast %132 : i32 to vector<8x1xi32>
    %145 = arith.addi %134, %144 : vector<8x1xi32>
    %146 = arith.select %143, %145, %134 : vector<8x1xi1>, vector<8x1xi32>
    %147 = vector.broadcast %146 : vector<8x1xi32> to vector<8x4xi32>
    %148 = arith.cmpi eq, %147, %52 : vector<8x4xi32>
    %cst_47 = arith.constant 0.000000e+00 : f32
    %149 = vector.shape_cast %51 : vector<8x1xf32> to vector<8x1xf32>
    %150 = vector.broadcast %149 : vector<8x1xf32> to vector<8x4xf32>
    %151 = vector.broadcast %cst_47 : f32 to vector<8x4xf32>
    %152 = arith.select %148, %150, %151 : vector<8x4xi1>, vector<8x4xf32>
    %153 = arith.addf %128, %152 : vector<8x4xf32>
    %c0_48 = arith.constant 0 : index
    %c0_49 = arith.constant 0 : index
    %154 = vector.load %arg6[%c0_48, %c0_49] : memref<4x32xf32, #tpu.memory_space<vmem>>, vector<4x32xf32>
    %cst_50 = arith.constant dense<0.000000e+00> : vector<8x32xf32>
    %155 = tpu.matmul %153, %154, %cst_50 {dimension_numbers = #tpu.dot_dimension_numbers<[1], [0], [0], [1], [0, 0, 1, 1], [], []>} : vector<8x4xf32>, vector<4x32xf32>, vector<8x32xf32> -> vector<8x32xf32>
    %c0_51 = arith.constant 0 : index
    %c0_52 = arith.constant 0 : index
    %c0_53 = arith.constant 0 : index
    %156 = vector.load %arg4[%c0_51, %c0_52, %c0_53] : memref<4x8x32xf32, #tpu.memory_space<vmem>>, vector<1x8x32xf32>
    %157 = vector.shape_cast %156 : vector<1x8x32xf32> to vector<8x32xf32>
    %cst_54 = arith.constant dense<0.000000e+00> : vector<8x32xf32>
    %158 = tpu.matmul %0, %157, %cst_54 {dimension_numbers = #tpu.dot_dimension_numbers<[1], [0], [0], [1], [0, 0, 1, 1], [], []>} : vector<8x8xf32>, vector<8x32xf32>, vector<8x32xf32> -> vector<8x32xf32>
    %c0_55 = arith.constant 0 : index
    %c0_56 = arith.constant 0 : index
    %c0_57 = arith.constant 0 : index
    %159 = vector.load %arg5[%c0_55, %c0_56, %c0_57] : memref<4x4x32xf32, #tpu.memory_space<vmem>>, vector<1x4x32xf32>
    %160 = vector.shape_cast %159 : vector<1x4x32xf32> to vector<4x32xf32>
    %cst_58 = arith.constant dense<0.000000e+00> : vector<8x32xf32>
    %161 = tpu.matmul %1, %160, %cst_58 {dimension_numbers = #tpu.dot_dimension_numbers<[1], [0], [0], [1], [0, 0, 1, 1], [], []>} : vector<8x4xf32>, vector<4x32xf32>, vector<8x32xf32> -> vector<8x32xf32>
    %162 = arith.addf %158, %161 : vector<8x32xf32>
    %163 = vector.extract_strided_slice %153 {offsets = [0, 0], sizes = [8, 1], strides = [1, 1]} : vector<8x4xf32> to vector<8x1xf32>
    %164 = vector.broadcast %163 : vector<8x1xf32> to vector<8x32xf32>
    %165 = arith.mulf %164, %162 : vector<8x32xf32>
    %166 = arith.addf %155, %165 : vector<8x32xf32>
    %c1 = arith.constant 1 : index
    %c0_59 = arith.constant 0 : index
    %c0_60 = arith.constant 0 : index
    %167 = vector.load %arg4[%c1, %c0_59, %c0_60] : memref<4x8x32xf32, #tpu.memory_space<vmem>>, vector<1x8x32xf32>
    %168 = vector.shape_cast %167 : vector<1x8x32xf32> to vector<8x32xf32>
    %cst_61 = arith.constant dense<0.000000e+00> : vector<8x32xf32>
    %169 = tpu.matmul %0, %168, %cst_61 {dimension_numbers = #tpu.dot_dimension_numbers<[1], [0], [0], [1], [0, 0, 1, 1], [], []>} : vector<8x8xf32>, vector<8x32xf32>, vector<8x32xf32> -> vector<8x32xf32>
    %c1_62 = arith.constant 1 : index
    %c0_63 = arith.constant 0 : index
    %c0_64 = arith.constant 0 : index
    %170 = vector.load %arg5[%c1_62, %c0_63, %c0_64] : memref<4x4x32xf32, #tpu.memory_space<vmem>>, vector<1x4x32xf32>
    %171 = vector.shape_cast %170 : vector<1x4x32xf32> to vector<4x32xf32>
    %cst_65 = arith.constant dense<0.000000e+00> : vector<8x32xf32>
    %172 = tpu.matmul %1, %171, %cst_65 {dimension_numbers = #tpu.dot_dimension_numbers<[1], [0], [0], [1], [0, 0, 1, 1], [], []>} : vector<8x4xf32>, vector<4x32xf32>, vector<8x32xf32> -> vector<8x32xf32>
    %173 = arith.addf %169, %172 : vector<8x32xf32>
    %174 = vector.extract_strided_slice %153 {offsets = [0, 1], sizes = [8, 1], strides = [1, 1]} : vector<8x4xf32> to vector<8x1xf32>
    %175 = vector.broadcast %174 : vector<8x1xf32> to vector<8x32xf32>
    %176 = arith.mulf %175, %173 : vector<8x32xf32>
    %177 = arith.addf %166, %176 : vector<8x32xf32>
    %c2 = arith.constant 2 : index
    %c0_66 = arith.constant 0 : index
    %c0_67 = arith.constant 0 : index
    %178 = vector.load %arg4[%c2, %c0_66, %c0_67] : memref<4x8x32xf32, #tpu.memory_space<vmem>>, vector<1x8x32xf32>
    %179 = vector.shape_cast %178 : vector<1x8x32xf32> to vector<8x32xf32>
    %cst_68 = arith.constant dense<0.000000e+00> : vector<8x32xf32>
    %180 = tpu.matmul %0, %179, %cst_68 {dimension_numbers = #tpu.dot_dimension_numbers<[1], [0], [0], [1], [0, 0, 1, 1], [], []>} : vector<8x8xf32>, vector<8x32xf32>, vector<8x32xf32> -> vector<8x32xf32>
    %c2_69 = arith.constant 2 : index
    %c0_70 = arith.constant 0 : index
    %c0_71 = arith.constant 0 : index
    %181 = vector.load %arg5[%c2_69, %c0_70, %c0_71] : memref<4x4x32xf32, #tpu.memory_space<vmem>>, vector<1x4x32xf32>
    %182 = vector.shape_cast %181 : vector<1x4x32xf32> to vector<4x32xf32>
    %cst_72 = arith.constant dense<0.000000e+00> : vector<8x32xf32>
    %183 = tpu.matmul %1, %182, %cst_72 {dimension_numbers = #tpu.dot_dimension_numbers<[1], [0], [0], [1], [0, 0, 1, 1], [], []>} : vector<8x4xf32>, vector<4x32xf32>, vector<8x32xf32> -> vector<8x32xf32>
    %184 = arith.addf %180, %183 : vector<8x32xf32>
    %185 = vector.extract_strided_slice %153 {offsets = [0, 2], sizes = [8, 1], strides = [1, 1]} : vector<8x4xf32> to vector<8x1xf32>
    %186 = vector.broadcast %185 : vector<8x1xf32> to vector<8x32xf32>
    %187 = arith.mulf %186, %184 : vector<8x32xf32>
    %188 = arith.addf %177, %187 : vector<8x32xf32>
    %c3 = arith.constant 3 : index
    %c0_73 = arith.constant 0 : index
    %c0_74 = arith.constant 0 : index
    %189 = vector.load %arg4[%c3, %c0_73, %c0_74] : memref<4x8x32xf32, #tpu.memory_space<vmem>>, vector<1x8x32xf32>
    %190 = vector.shape_cast %189 : vector<1x8x32xf32> to vector<8x32xf32>
    %cst_75 = arith.constant dense<0.000000e+00> : vector<8x32xf32>
    %191 = tpu.matmul %0, %190, %cst_75 {dimension_numbers = #tpu.dot_dimension_numbers<[1], [0], [0], [1], [0, 0, 1, 1], [], []>} : vector<8x8xf32>, vector<8x32xf32>, vector<8x32xf32> -> vector<8x32xf32>
    %c3_76 = arith.constant 3 : index
    %c0_77 = arith.constant 0 : index
    %c0_78 = arith.constant 0 : index
    %192 = vector.load %arg5[%c3_76, %c0_77, %c0_78] : memref<4x4x32xf32, #tpu.memory_space<vmem>>, vector<1x4x32xf32>
    %193 = vector.shape_cast %192 : vector<1x4x32xf32> to vector<4x32xf32>
    %cst_79 = arith.constant dense<0.000000e+00> : vector<8x32xf32>
    %194 = tpu.matmul %1, %193, %cst_79 {dimension_numbers = #tpu.dot_dimension_numbers<[1], [0], [0], [1], [0, 0, 1, 1], [], []>} : vector<8x4xf32>, vector<4x32xf32>, vector<8x32xf32> -> vector<8x32xf32>
    %195 = arith.addf %191, %194 : vector<8x32xf32>
    %196 = vector.extract_strided_slice %153 {offsets = [0, 3], sizes = [8, 1], strides = [1, 1]} : vector<8x4xf32> to vector<8x1xf32>
    %197 = vector.broadcast %196 : vector<8x1xf32> to vector<8x32xf32>
    %198 = arith.mulf %197, %195 : vector<8x32xf32>
    %199 = arith.addf %188, %198 : vector<8x32xf32>
    %cst_80 = arith.constant 0.000000e+00 : f32
    %200 = vector.broadcast %cst_80 : f32 to vector<8x32xf32>
    %201 = arith.maximumf %199, %200 : vector<8x32xf32>
    %202 = vector.extract_strided_slice %153 {offsets = [0, 0], sizes = [8, 1], strides = [1, 1]} : vector<8x4xf32> to vector<8x1xf32>
    %203 = vector.broadcast %202 : vector<8x1xf32> to vector<8x32xf32>
    %204 = arith.mulf %203, %201 : vector<8x32xf32>
    %205 = vector.extract_strided_slice %153 {offsets = [0, 1], sizes = [8, 1], strides = [1, 1]} : vector<8x4xf32> to vector<8x1xf32>
    %206 = vector.broadcast %205 : vector<8x1xf32> to vector<8x32xf32>
    %207 = arith.mulf %206, %201 : vector<8x32xf32>
    %208 = vector.extract_strided_slice %153 {offsets = [0, 2], sizes = [8, 1], strides = [1, 1]} : vector<8x4xf32> to vector<8x1xf32>
    %209 = vector.broadcast %208 : vector<8x1xf32> to vector<8x32xf32>
    %210 = arith.mulf %209, %201 : vector<8x32xf32>
    %211 = vector.extract_strided_slice %153 {offsets = [0, 3], sizes = [8, 1], strides = [1, 1]} : vector<8x4xf32> to vector<8x1xf32>
    %212 = vector.broadcast %211 : vector<8x1xf32> to vector<8x32xf32>
    %213 = arith.mulf %212, %201 : vector<8x32xf32>
    %214 = tpu.concatenate %204, %207, %210, %213 in 1 : vector<8x32xf32>, vector<8x32xf32>, vector<8x32xf32>, vector<8x32xf32> -> vector<8x128xf32>
    %c0_81 = arith.constant 0 : index
    %c0_82 = arith.constant 0 : index
    %215 = vector.load %arg7[%c0_81, %c0_82] : memref<128x16xf32, #tpu.memory_space<vmem>>, vector<128x16xf32>
    %cst_83 = arith.constant dense<0.000000e+00> : vector<8x16xf32>
    %216 = tpu.matmul %214, %215, %cst_83 {dimension_numbers = #tpu.dot_dimension_numbers<[1], [0], [0], [1], [0, 0, 1, 1], [], []>} : vector<8x128xf32>, vector<128x16xf32>, vector<8x16xf32> -> vector<8x16xf32>
    %c0_84 = arith.constant 0 : index
    %c0_85 = arith.constant 0 : index
    %217 = vector.load %arg8[%c0_84, %c0_85] : memref<4x16xf32, #tpu.memory_space<vmem>>, vector<4x16xf32>
    %cst_86 = arith.constant dense<0.000000e+00> : vector<8x16xf32>
    %218 = tpu.matmul %153, %217, %cst_86 {dimension_numbers = #tpu.dot_dimension_numbers<[1], [0], [0], [1], [0, 0, 1, 1], [], []>} : vector<8x4xf32>, vector<4x16xf32>, vector<8x16xf32> -> vector<8x16xf32>
    %219 = arith.addf %216, %218 : vector<8x16xf32>
    %c0_87 = arith.constant 0 : index
    %c0_88 = arith.constant 0 : index
    %220 = vector.load %arg9[%c0_87, %c0_88] : memref<16x2xf32, #tpu.memory_space<vmem>>, vector<16x2xf32>
    %cst_89 = arith.constant dense<0.000000e+00> : vector<8x2xf32>
    %221 = tpu.matmul %219, %220, %cst_89 {dimension_numbers = #tpu.dot_dimension_numbers<[1], [0], [0], [1], [0, 0, 1, 1], [], []>} : vector<8x16xf32>, vector<16x2xf32>, vector<8x2xf32> -> vector<8x2xf32>
    %c0_90 = arith.constant 0 : index
    %c0_91 = arith.constant 0 : index
    %222 = vector.load %arg10[%c0_90, %c0_91] : memref<1x2xf32, #tpu.memory_space<vmem>>, vector<1x2xf32>
    %223 = vector.broadcast %222 : vector<1x2xf32> to vector<8x2xf32>
    %224 = arith.addf %221, %223 : vector<8x2xf32>
    %c0_92 = arith.constant 0 : index
    %c0_93 = arith.constant 0 : index
    %225 = vector.load %arg11[%c0_92, %c0_93] : memref<8x2xf32, #tpu.memory_space<vmem>>, vector<8x2xf32>
    tpu.vector_store %arg11[%c0_92, %c0_93], %224 {strides = array<i32>} : memref<8x2xf32, #tpu.memory_space<vmem>>, vector<8x2xf32>,
    return
  }
  func.func @transform_0(%arg0: i32) -> (i32, i32) {
    %c0_i32 = arith.constant 0 : i32
    %c0_i32_0 = arith.constant 0 : i32
    return %arg0, %c0_i32 : i32, i32
  }
  func.func @transform_1(%arg0: i32) -> (i32, i32) {
    %c0_i32 = arith.constant 0 : i32
    %c0_i32_0 = arith.constant 0 : i32
    return %arg0, %c0_i32 : i32, i32
  }
  func.func @transform_2(%arg0: i32) -> (i32, i32) {
    %c0_i32 = arith.constant 0 : i32
    %c0_i32_0 = arith.constant 0 : i32
    return %arg0, %c0_i32 : i32, i32
  }
  func.func @transform_3(%arg0: i32) -> (i32, i32, i32) {
    %c0_i32 = arith.constant 0 : i32
    %c0_i32_0 = arith.constant 0 : i32
    %c0_i32_1 = arith.constant 0 : i32
    %c0_i32_2 = arith.constant 0 : i32
    return %c0_i32, %c0_i32_0, %c0_i32_1 : i32, i32, i32
  }
  func.func @transform_4(%arg0: i32) -> (i32, i32, i32) {
    %c0_i32 = arith.constant 0 : i32
    %c0_i32_0 = arith.constant 0 : i32
    %c0_i32_1 = arith.constant 0 : i32
    %c0_i32_2 = arith.constant 0 : i32
    return %c0_i32, %c0_i32_0, %c0_i32_1 : i32, i32, i32
  }
  func.func @transform_5(%arg0: i32) -> (i32, i32) {
    %c0_i32 = arith.constant 0 : i32
    %c0_i32_0 = arith.constant 0 : i32
    %c0_i32_1 = arith.constant 0 : i32
    return %c0_i32, %c0_i32_0 : i32, i32
  }
  func.func @transform_6(%arg0: i32) -> (i32, i32) {
    %c0_i32 = arith.constant 0 : i32
    %c0_i32_0 = arith.constant 0 : i32
    %c0_i32_1 = arith.constant 0 : i32
    return %c0_i32, %c0_i32_0 : i32, i32
  }
  func.func @transform_7(%arg0: i32) -> (i32, i32) {
    %c0_i32 = arith.constant 0 : i32
    %c0_i32_0 = arith.constant 0 : i32
    %c0_i32_1 = arith.constant 0 : i32
    return %c0_i32, %c0_i32_0 : i32, i32
  }
  func.func @transform_8(%arg0: i32) -> (i32, i32) {
    %c0_i32 = arith.constant 0 : i32
    %c0_i32_0 = arith.constant 0 : i32
    %c0_i32_1 = arith.constant 0 : i32
    return %c0_i32, %c0_i32_0 : i32, i32
  }
  func.func @transform_9(%arg0: i32) -> (i32, i32) {
    %c0_i32 = arith.constant 0 : i32
    %c0_i32_0 = arith.constant 0 : i32
    %c0_i32_1 = arith.constant 0 : i32
    return %c0_i32, %c0_i32_0 : i32, i32
  }
  func.func @transform_10(%arg0: i32) -> (i32, i32) {
    %c0_i32 = arith.constant 0 : i32
    %c0_i32_0 = arith.constant 0 : i32
    return %arg0, %c0_i32 : i32, i32
  }
}

</mosaic_0001>

<bundles_post_ra>
// kernel: tpu_custom_call.1
= control target key start
LH: loop header
LB: loop body
LE: loop exit
PB: predicated region body
PF: predicated region fallthrough
CT: control target
= control target key end

     0   :  { %vm1588_vm0 = vcmask 1043456   ;;  %v1350_v0 = vmov 0   ;;  %vm1587_vm1 = vcmask 31744   ;;  %v1351_v5 = vmov 0.0   ;;  %s1359_s20 = smov 96   ;;  %s1576_s2 = inlined_call_operand.vmem [shape: f32[8,1], index: 2, kind: input, shape index: {}]   ;;  %s1577_s4 = inlined_call_operand.vmem [shape: f32[4,4,32], index: 4, kind: input, shape index: {}]   ;;  %s1578_s1 = inlined_call_operand.vmem [shape: f32[8,4], index: 1, kind: input, shape index: {}]   ;;  %s1579_s3 = inlined_call_operand.vmem [shape: f32[4,8,32], index: 3, kind: input, shape index: {}]   ;;  %s1580_s0 = inlined_call_operand.vmem [shape: f32[8,8], index: 0, kind: input, shape index: {}]   ;;  %s1581_s5 = inlined_call_operand.vmem [shape: f32[4,32], index: 5, kind: input, shape index: {}]   ;;  %s1582_s7 = inlined_call_operand.vmem [shape: f32[4,16], index: 7, kind: input, shape index: {}]   ;;  %s1583_s6 = inlined_call_operand.vmem [shape: f32[128,16], index: 6, kind: input, shape index: {}]   ;;  %s1584_s8 = inlined_call_operand.vmem [shape: f32[16,2], index: 8, kind: input, shape index: {}]   ;;  %s1585_s9 = inlined_call_operand.vmem [shape: f32[1,2], index: 9, kind: input, shape index: {}]   ;;  %s1586_s10 = inlined_call_operand.vmem [shape: f32[8,2], index: 10, kind: output, shape index: {}]  }
   0x1   :  { %1344 = vset.pattern.permute.xlu1 %v1350_v0  ;;  %v37_v1 = vld [vmem:[%s1576_s2] sm:$0xff]  ;;  %1345 = vset.pattern.permute.xlu0 %v1350_v0  ;;  %vm1352_vm2 = vmmov 0   ;;  %vm249_vm3 = vcmask 64512  }
   0x2   :  { %v170_v2 = vld [vmem:[%s1577_s4] sm:$0xf]  ;;  %v38_v4 = vmul.f32 0.63661975, %v37_v1  ;;  %1204 = vmatprep.subr.mxu1 %v1351_v5  ;;  %1206 = vmatprep.mubr.msk.f32.mxu1 %vm1352_vm2, %v1351_v5 }
   0x3   :  { %v1424_v3 = vld [vmem:[%s1578_s1] sm:$0xff]  ;;  %1205 = vmatpush3.msk.msra.mxu1 %vm1588_vm0, %v170_v2  ;;  %1234 = vmatprep.subr.mxu0 %v1351_v5  ;;  %s1358_s1 = smov 32  }
   0x4   :  { %v169_v6 = vld [vmem:[%s1579_s3] sm:$0xff]  ;;  %v39_v7 = vfloor.f32 %v38_v4  ;;  %1207 = vmatmul.mubr.msk.f32.vlgmr.msra.gmra.mrb[0].mxu1 %vm1587_vm1, %v1424_v3  ;;  %1209 = vmatprep.subr.mxu1 %v1351_v5 }
   0x5   :  { %1210 = vmatpush3.msra.mxu1 %v169_v6  ;;  %1211 = vmatprep.mubr.msk.f32.mxu1 %vm1352_vm2, %v1351_v5  ;;  %v1445_v13 = vld [vmem:[%s1580_s0] sm:$0xff] }
   0x6   :  { %v40_v8 = vsub.f32 %v38_v4, %v39_v7  ;;  %v1332_v9 = vtrunc.f32 %v39_v7  ;;  %1236 = vmatprep.mubr.msk.f32.mxu0 %vm1352_vm2, %v1351_v5  ;;  %1214 = vmatprep.subr.mxu1 %v1351_v5  ;;  %v1150_v4 = vld [vmem:[%s1579_s3 + $0x10] sm:$0xff]  ;;  %v168_v6 = vld [vmem:[%s1581_s5] sm:$0xf] }
   0x7   :  { %1235 = vmatpush3.msra.mxu0 %v1150_v4  ;;  %v902_v7 = vld [vmem:[%s1582_s7] sm:$0xf] }
   0x8   :  { %v1333_v10 = vcvt.f32.s32 %v1332_v9  ;;  %v54_v11 = vmul.f32 %v40_v8, %v40_v8  ;;  %v56_v12 = vmul.f32 -0.5, %v40_v8  ;;  %v64_v18 = vmul.f32 0.5, %v40_v8  ;;  %1237 = vmatmul.mubr.msk.f32.vlgmr.msra.gmra.mrb[0].mxu0 %vm249_vm3, %v1445_v13  ;;  %1249 = vmatprep.subr.mxu0 %v1351_v5 }
   0x9   :  { %1251 = vmatprep.mubr.msk.f32.mxu0 %vm1352_vm2, %v1351_v5 }
   0xa   :  { %v43_v14 = vsub.s32 0, %v1333_v10  ;;  %v55_v15 = vmul.f32 %v54_v11, %v40_v8  ;;  %v57_v16 = vadd.f32 %v56_v12, %v54_v11  ;;  %v60_v17 = vmul.f32 2.5, %v54_v11 }
   0xb   :  { %v65_v19 = vmul.f32 2.0, %v54_v11  ;;  %vm42_vm4 = vcmp.lt.s32.totalorder %v1333_v10, 0  ;;  %v68_v32 = vmul.f32 -0.5, %v54_v11  ;;  %v1353_v8 = vmov 1  }
   0xc   :  { %v1135_v20 = vmin.u32 %v1333_v10, %v43_v14  ;;  %v58_v21 = vmul.f32 0.5, %v55_v15  ;;  %v61_v22 = vsub.f32 1.0, %v60_v17  ;;  %v62_v23 = vmul.f32 1.5, %v55_v15  ;;  %1212 = vmatmul.mubr.msk.f32.vlgmr.msra.gmra.mrb[0].mxu1 %vm249_vm3, %v1445_v13 }
   0xd   :  { %1216 = vmatprep.mubr.msk.f32.mxu1 %vm1352_vm2, %v1351_v5  ;;  %v66_v27 = vadd.f32 %v65_v19, %v64_v18  ;;  %v70_v10 = vlaneseq }
   0xe   :  { %v46_v24 = vand.u32 3, %v1135_v20  ;;  %v59_v25 = vsub.f32 %v57_v16, %v58_v21  ;;  %v63_v26 = vadd.f32 %v62_v23, %v61_v22  ;;  %v69_v39 = vadd.f32 %v68_v32, %v58_v21  ;;  %v1156_v32 = vld [vmem:[%s1577_s4 + $0xc] sm:$0xf] }
   0xf   :  { %v67_v31 = vsub.f32 %v66_v27, %v62_v23  ;;  %v71_v14 = vand.u32 127, %v70_v10  ;;  %v1146_v27 = vld [vmem:[%s1577_s4 + $0x4] sm:$0xf] }
  0x10   :  { %91 = vperm.xlu1 %1344, %v59_v25   ;;  %v47_v28 = vsub.s32 0, %v46_v24 }
  0x12   :  { %v48_v29 = vsel %vm42_vm4, %v47_v28, %v46_v24  ;;  %v1145_v28 = vld [vmem:[%s1579_s3 + $0x8] sm:$0xff] }
  0x13   :  { %vm49_vm5 = vcmp.ne.s32.totalorder %v48_v29, 0  ;;  %vm50_vm6 = vcmp.lt.s32.totalorder %v48_v29, 0  ;;  %v52_v30 = vadd.s32 4, %v48_v29 }
  0x14   :  { %115 = vperm.xlu1 %1344, %v63_v26   ;;  %vm51_vm7 = vmand %vm50_vm6, %vm49_vm5 }
  0x15   :  { %v53_v33 = vsel %vm51_vm7, %v52_v30, %v48_v29  ;;  %v1354_v29 = vmov 3   ;;  %v1355_v30 = vmov 2  }
  0x16   :  { %v72_v34 = vadd.s32 3, %v53_v33  ;;  %v96_v35 = vadd.s32 4, %v53_v33  ;;  %v120_v36 = vadd.s32 5, %v53_v33  ;;  %v144_v37 = vadd.s32 6, %v53_v33  ;;  %v1155_v33 = vld [vmem:[%s1579_s3 + $0x18] sm:$0xff] }
  0x18   :  { %139 = vperm.xlu1 %1344, %v67_v31   ;;  %v74_v38 = vsub.s32 0, %v72_v34  ;;  %v98_v40 = vsub.s32 0, %v96_v35  ;;  %v122_v41 = vsub.s32 0, %v120_v36  ;;  %v146_v42 = vsub.s32 0, %v144_v37  ;;  %v1151_v31 = vld [vmem:[%s1577_s4 + $0x8] sm:$0xf] }
  0x19   :  { %vm73_vm8 = vcmp.lt.s32.totalorder %v72_v34, 0  ;;  %vm97_vm9 = vcmp.lt.s32.totalorder %v96_v35, 0  ;;  %vm121_vm10 = vcmp.lt.s32.totalorder %v120_v36, 0  ;;  %vm145_vm11 = vcmp.lt.s32.totalorder %v144_v37, 0 }
  0x1a   :  { %v1136_v43 = vmin.u32 %v74_v38, %v72_v34  ;;  %v1137_v44 = vmin.u32 %v98_v40, %v96_v35  ;;  %v1138_v45 = vmin.u32 %v122_v41, %v120_v36  ;;  %v1139_v46 = vmin.u32 %v146_v42, %v144_v37  ;;  %v889_v40 = vld [vmem:[%s1583_s6 + $0x18] sm:$0xff]  ;;  %v890_v42 = vld [vmem:[%s1583_s6 + $0x20] sm:$0xff] }
  0x1b   :  { %v1356_v38 = vmov 0.0|0.0  }
  0x1c   :  { %v77_v47 = vand.u32 3, %v1136_v43  ;;  %163 = vperm.xlu1 %1344, %v69_v39   ;;  %v101_v48 = vand.u32 3, %v1137_v44  ;;  %v125_v49 = vand.u32 3, %v1138_v45  ;;  %v149_v50 = vand.u32 3, %v1139_v46  ;;  %v887_v39 = vld [vmem:[%s1583_s6 + $0x8] sm:$0xff]  ;;  %v892_v45 = vld [vmem:[%s1583_s6 + $0x30] sm:$0xff] }
  0x1d   :  { %v891_v43 = vld [vmem:[%s1583_s6 + $0x28] sm:$0xff]  ;;  %v893_v46 = vld [vmem:[%s1583_s6 + $0x38] sm:$0xff] }
  0x1e   :  { %v78_v51 = vsub.s32 0, %v77_v47  ;;  %v102_v52 = vsub.s32 0, %v101_v48  ;;  %v126_v53 = vsub.s32 0, %v125_v49  ;;  %v150_v56 = vsub.s32 0, %v149_v50 }
  0x1f   :  { %v1303_v44 = vpack.c.bf16 %v891_v43, %v890_v42 }
  0x20   :  { %v79_v54 = vsel %vm73_vm8, %v78_v51, %v77_v47  ;;  %v103_v55 = vsel %vm97_vm9, %v102_v52, %v101_v48  ;;  %v127_v59 = vsel %vm121_vm10, %v126_v53, %v125_v49  ;;  %v151_v61 = vsel %vm145_vm11, %v150_v56, %v149_v50  ;;  %1346 = vset.pattern.permute.xlu1 %v1353_v8  ;;  %v894_v48 = vld [vmem:[%s1583_s6 + $0x40] sm:$0xff]  ;;  %v895_v49 = vld [vmem:[%s1583_s6 + $0x48] sm:$0xff]  ;;  %v896_v51 = vld [vmem:[%s1583_s6 + $0x50] sm:$0xff] }
  0x21   :  { %vm80_vm12 = vcmp.ne.s32.totalorder %v79_v54, 0  ;;  %vm81_vm13 = vcmp.lt.s32.totalorder %v79_v54, 0  ;;  %v83_v57 = vadd.s32 4, %v79_v54  ;;  %vm104_vm14 = vcmp.ne.s32.totalorder %v103_v55, 0  ;;  %v897_v52 = vld [vmem:[%s1583_s6 + $0x58] sm:$0xff] }
  0x22   :  { %vm82_vm15 = vmand %vm81_vm13, %vm80_vm12  ;;  %vm105_vm4 = vcmp.lt.s32.totalorder %v103_v55, 0  ;;  %v107_v58 = vadd.s32 4, %v103_v55  ;;  %vm128_vm6 = vcmp.ne.s32.totalorder %v127_v59, 0  ;;  %vm129_vm7 = vcmp.lt.s32.totalorder %v127_v59, 0 }
  0x23   :  { %v84_v60 = vsel %vm82_vm15, %v83_v57, %v79_v54  ;;  %vm106_vm5 = vmand %vm105_vm4, %vm104_vm14  ;;  %v131_v63 = vadd.s32 4, %v127_v59  ;;  %vm152_vm9 = vcmp.ne.s32.totalorder %v151_v61, 0  ;;  %vm153_vm1 = vcmp.lt.s32.totalorder %v151_v61, 0  ;;  %v898_v54 = vld [vmem:[%s1583_s6 + $0x60] sm:$0xff] }
  0x24   :  { %86 = vperm.xlu0 %1345, %v84_v60   ;;  %v108_v62 = vsel %vm106_vm5, %v107_v58, %v103_v55  ;;  %vm130_vm8 = vmand %vm129_vm7, %vm128_vm6  ;;  %v155_v1 = vadd.s32 4, %v151_v61  ;;  %vm1591_vm14 = vcmask 31744   ;;  %v1306_v47 = vpack.c.bf16 %v893_v46, %v892_v45  ;;  %v899_v55 = vld [vmem:[%s1583_s6 + $0x68] sm:$0xff] }
  0x25   :  { %v132_v0 = vsel %vm130_vm8, %v131_v63, %v127_v59  ;;  %vm154_vm0 = vmand %vm153_vm1, %vm152_vm9  ;;  %v1309_v50 = vpack.c.bf16 %v895_v49, %v894_v48  ;;  %v1312_v53 = vpack.c.bf16 %v897_v52, %v896_v51  ;;  %v1315_v56 = vpack.c.bf16 %v899_v55, %v898_v54 }
  0x26   :  { %v156_v2 = vsel %vm154_vm0, %v155_v1, %v151_v61  ;;  %vm1589_vm0 = vcmask 1043456   ;;  %vm1592_vm15 = vmmov %vm1591_vm14 }
  0x27   :  { %1215 = vmatpush3.msk.msra.mxu1 %vm1589_vm0, %v168_v6  ;;  %vm1590_vm1 = vmmov %vm1589_vm0 }
  0x28   :  { %110 = vperm.xlu0 %1345, %v108_v62   ;;  %1219 = vmatprep.subr.mxu1 %v1351_v5  ;;  %vm1593_vm4 = vmmov %vm1589_vm0 }
  0x29   :  { %1250 = vmatpush3.msk.msra.mxu0 %vm1590_vm1, %v902_v7  ;;  %vm1594_vm5 = vmmov %vm1591_vm14  ;;  %vm1055_vm1 = vcmask 130048  }
  0x2a   :  { %vm1595_vm6 = vmmov %vm1589_vm0  ;;  %1296 = vmatprep.subr.bf16.mxu0 %v1356_v38 }
  0x2b   :  { %vm1596_vm7 = vmmov %vm1594_vm5 }
  0x2c   :  { %134 = vperm.xlu0 %1345, %v132_v0   ;;  %vm1597_vm8 = vmmov %vm1589_vm0  ;;  %vm884_vm0 = vcmask 785408  }
  0x2d   :  { %vm1598_vm9 = vmmov %vm1594_vm5 }
  0x30   :  { %158 = vperm.xlu0 %1345, %v156_v2  }
  0x8f   :  { %v92_v9 = vpop.permute.xlu1 %91 }
  0x93   :  { %v116_v12 = vpop.permute.xlu1 %115 }
  0x97   :  { %v140_v16 = vpop.permute.xlu1 %139 }
  0x9b   :  { %v164_v23 = vpop.permute.xlu1 %163 }
  0xa3   :  { %v87_v11 = vpop.permute.xlu0 %86 }
  0xa4   :  { %vm88_vm11 = vcmp.eq.s32.totalorder %v87_v11, %v71_v14  ;;  %v900_v11 = vld [vmem:[%s1583_s6 + $0x70] sm:$0xff] }
  0xa5   :  { %v94_v19 = vsel %vm88_vm11, %v92_v9, 0.0 }
  0xa7   :  { %v111_v15 = vpop.permute.xlu0 %110 }
  0xa8   :  { %vm112_vm10 = vcmp.eq.s32.totalorder %v111_v15, %v71_v14 }
  0xa9   :  { %v118_v17 = vsel %vm112_vm10, %v116_v12, 0.0  ;;  %v901_v12 = vld [vmem:[%s1583_s6 + $0x78] sm:$0xff]  ;;  %vm1129_vm10 = vcmask 15360  }
  0xaa   :  { %v119_v21 = vadd.f32 %v118_v17, %v94_v19  ;;  %v1046_v19 = vld [vmem:[%s1584_s8] sm:$0xff] }
  0xab   :  { %v135_v18 = vpop.permute.xlu0 %134 }
  0xac   :  { %vm136_vm12 = vcmp.eq.s32.totalorder %v135_v18, %v71_v14 }
  0xad   :  { %v142_v20 = vsel %vm136_vm12, %v140_v16, 0.0 }
  0xae   :  { %v143_v24 = vadd.f32 %v142_v20, %v119_v21  ;;  %v1047_v20 = vld [vmem:[%s1584_s8 + $0x8] sm:$0xff] }
  0xaf   :  { %v159_v22 = vpop.permute.xlu0 %158 }
  0xb0   :  { %vm160_vm13 = vcmp.eq.s32.totalorder %v159_v22, %v71_v14  ;;  %v1318_v14 = vpack.c.bf16 %v901_v12, %v900_v11  ;;  %v1321_v22 = vpack.c.bf16 %v1047_v20, %v1046_v19 }
  0xb1   :  { %v166_v25 = vsel %vm160_vm13, %v164_v23, 0.0 }
  0xb2   :  { %v167_v26 = vadd.f32 %v166_v25, %v143_v24 }
  0xb4   :  { %552 = vperm.xlu1 %1346, %v167_v26   ;;  %325 = vperm.xlu0 %1345, %v167_v26  }
  0xb5   :  { %1217 = vmatmul.mubr.msk.f32.vlgmr.msra.gmra.mrb[2].mxu1 %vm1591_vm14, %v167_v26  ;;  %1252 = vmatmul.mubr.msk.f32.vlgmr.msra.gmra.mrb[2].mxu0 %vm1592_vm15, %v167_v26 }
  0xb6   :  { %1220 = vmatpush3.msk.msra.mxu1 %vm1593_vm4, %v1146_v27  ;;  %1221 = vmatprep.mubr.msk.f32.mxu1 %vm1352_vm2, %v1351_v5 }
  0xb7   :  { %1224 = vmatprep.subr.mxu1 %v1351_v5  ;;  %1286 = vmatprep.mubr.msk.f32.mxu0 %vm1352_vm2, %v1351_v5 }
  0xb8   :  { %1348 = vset.pattern.permute.xlu1 %v1354_v29  ;;  %1347 = vset.pattern.permute.xlu0 %v1355_v30 }
  0xb9   :  { %1222 = vmatmul.mubr.msk.f32.vlgmr.msra.gmra.mrb[4].mxu1 %vm1594_vm5, %v1424_v3  ;;  %858 = vperm.xlu1 %1348, %v167_v26  }
  0xba   :  { %1225 = vmatpush3.msra.mxu1 %v1145_v28  ;;  %705 = vperm.xlu0 %1347, %v167_v26  }
  0xbb   :  { %1226 = vmatprep.mubr.msk.f32.mxu1 %vm1352_vm2, %v1351_v5  ;;  %1229 = vmatprep.subr.mxu1 %v1351_v5 }
  0xbe   :  { %1349 = vset.pattern.permute.xlu0 %v1354_v29 }
  0xc1   :  { %1227 = vmatmul.mubr.msk.f32.vlgmr.msra.gmra.mrb[4].mxu1 %vm249_vm3, %v1445_v13 }
  0xc2   :  { %1230 = vmatpush3.msk.msra.mxu1 %vm1595_vm6, %v1151_v31  ;;  %1231 = vmatprep.mubr.msk.f32.mxu1 %vm1352_vm2, %v1351_v5 }
  0xc3   :  { %1239 = vmatprep.subr.mxu1 %v1351_v5 }
  0xc5   :  { %1232 = vmatmul.mubr.msk.f32.vlgmr.msra.gmra.mrb[6].mxu1 %vm1596_vm7, %v1424_v3 }
  0xc6   :  { %1240 = vmatpush3.msk.msra.mxu1 %vm1597_vm8, %v1156_v32  ;;  %1241 = vmatprep.mubr.msk.f32.mxu1 %vm1352_vm2, %v1351_v5 }
  0xc7   :  { %1244 = vmatprep.subr.mxu1 %v1351_v5 }
  0xc9   :  { %1242 = vmatmul.mubr.msk.f32.vlgmr.msra.gmra.mrb[8].mxu1 %vm1598_vm9, %v1424_v3  ;;  %v886_v3 = vld [vmem:[%s1583_s6] sm:$0xff] }
  0xca   :  { %1245 = vmatpush3.msra.mxu1 %v1155_v33  ;;  %1246 = vmatprep.mubr.msk.f32.mxu1 %vm1352_vm2, %v1351_v5 }
  0xcb   :  { %1320 = vmatprep.subr.bf16.mxu1 %v1356_v38 }
  0xd1   :  { %1247 = vmatmul.mubr.msk.f32.vlgmr.msra.gmra.mrb[8].mxu1 %vm249_vm3, %v1445_v13  ;;  %v888_v13 = vld [vmem:[%s1583_s6 + $0x10] sm:$0xff]  ;;  %s1357_s6 = smov 64   ;;  %vm882_vm3 = vcmask 523264  }
  0xd2   :  { %1293 = vmatprep.mubr.msk.f32.mxu1 %vm1352_vm2, %v1351_v5  ;;  %v1297_v5 = vpack.c.bf16 %v887_v39, %v886_v3  ;;  %v1300_v41 = vpack.c.bf16 %v889_v40, %v888_v13  ;;  %1322 = vmatpush3.bf16.msra.mxu1 %v1321_v22  ;;  %vm880_vm2 = vcmask 261120  }
  0xd4   :  { %1298 = vmatpush3.bf16.msra.mxu0 %v1297_v5 }
  0xd5   :  { %1299 = vmatprep.subr.bf16.mxu0 %v1356_v38 }
  0xd8   :  { %1301 = vmatpush3.bf16.msra.mxu0 %v1300_v41 }
  0xd9   :  { %1302 = vmatprep.subr.bf16.mxu0 %v1356_v38 }
  0xdb   :  { %v700_v36 = vpop.f32.mrb[0].mxu0 }
  0xdc   :  { %v1238_v37 = vpop.f32.mrb[1].mxu0  ;;  %1304 = vmatpush3.bf16.msra.mxu0 %v1303_v44 }
  0xdd   :  { %1305 = vmatprep.subr.bf16.mxu0 %v1356_v38 }
  0xdf   :  { %v319_v34 = vpop.f32.mrb[0].mxu1 }
  0xe0   :  { %v1213_v35 = vpop.f32.mrb[1].mxu1  ;;  %1307 = vmatpush3.bf16.msra.mxu0 %v1306_v47 }
  0xe1   :  { %1308 = vmatprep.subr.bf16.mxu0 %v1356_v38 }
  0xe4   :  { %1310 = vmatpush3.bf16.msra.mxu0 %v1309_v50 }
  0xe5   :  { %1311 = vmatprep.subr.bf16.mxu0 %v1356_v38 }
  0xe8   :  { %1313 = vmatpush3.bf16.msra.mxu0 %v1312_v53 }
  0xe9   :  { %1314 = vmatprep.subr.bf16.mxu0 %v1356_v38 }
  0xec   :  { %1316 = vmatpush3.bf16.msra.mxu0 %v1315_v56 }
  0xed   :  { %1317 = vmatprep.subr.bf16.mxu0 %v1356_v38 }
  0xf0   :  { %1319 = vmatpush3.bf16.msra.mxu0 %v1318_v14 }
 0x133   :  { %v326_v57 = vpop.permute.xlu0 %325  ;;  %v553_v62 = vpop.permute.xlu1 %552 }
 0x134   :  { %v328_v58 = vmul.f32 %v326_v57, %v319_v34 }
 0x138   :  { %v859_v15 = vpop.permute.xlu1 %858 }
 0x139   :  { %v706_v8 = vpop.permute.xlu0 %705 }
 0x188   :  { %v400_v59 = vpop.f32.mrb[2].mxu1 }
 0x189   :  { %v401_v60 = vadd.f32 %v400_v59, %v328_v58  ;;  %v1218_v61 = vpop.f32.mrb[3].mxu1 }
 0x194   :  { %v547_v63 = vpop.f32.mrb[4].mxu1 }
 0x195   :  { %v555_v0 = vmul.f32 %v553_v62, %v547_v63  ;;  %v1228_v1 = vpop.f32.mrb[5].mxu1 }
 0x197   :  { %v556_v2 = vadd.f32 %v555_v0, %v401_v60 }
 0x198   :  { %v630_v4 = vpop.f32.mrb[6].mxu1 }
 0x199   :  { %v701_v6 = vadd.f32 %v700_v36, %v630_v4  ;;  %v1233_v7 = vpop.f32.mrb[7].mxu1  ;;  %v1162_v36 = vld [vmem:[%s1585_s9] ss:$0 sm:$0xff] }
 0x19b   :  { %v708_v9 = vmul.f32 %v706_v8, %v701_v6 }
 0x19d   :  { %v709_v10 = vadd.f32 %v708_v9, %v556_v2 }
 0x1a4   :  { %v853_v16 = vpop.f32.mrb[8].mxu1 }
 0x1a5   :  { %v861_v17 = vmul.f32 %v859_v15, %v853_v16  ;;  %v1248_v18 = vpop.f32.mrb[9].mxu1 }
 0x1a7   :  { %v862_v21 = vadd.f32 %v861_v17, %v709_v10 }
 0x1a9   :  { %v863_v23 = vmax.f32 %v862_v21, 0.0 }
 0x1ab   :  { %v866_v24 = vmul.f32 %v863_v23, %v706_v8  ;;  %v865_v25 = vmul.f32 %v863_v23, %v553_v62  ;;  %v867_v26 = vmul.f32 %v863_v23, %v859_v15  ;;  %v864_v27 = vmul.f32 %v863_v23, %v326_v57 }
 0x1ad   :  { %873 = vrot.lane.b32.xlu0 %v866_v24, %s1357_s6  ;;  %869 = vrot.lane.b32.xlu1 %v865_v25, %s1358_s1 }
 0x1b1   :  { %877 = vrot.lane.b32.xlu1 %v867_v26, %s1359_s20 }
 0x21f   :  { %v870_v28 = vpop.permute.xlu1 %869  ;;  %v874_v29 = vpop.permute.xlu0 %873 }
 0x220   :  { %v881_v30 = vsel %vm880_vm2, %v864_v27, %v870_v28 }
 0x221   :  { %v883_v32 = vsel %vm882_vm3, %v881_v30, %v874_v29 }
 0x223   :  { %v878_v31 = vpop.permute.xlu1 %877 }
 0x224   :  { %v885_v33 = vsel %vm884_vm0, %v883_v32, %v878_v31 }
 0x225   :  { %1287 = vmatmul.mubr.f32.vlgmr.msra.gmra.mrb[2].mxu0 %v885_v33 }
 0x2f8   :  { %v1042_v34 = vpop.f32.mrb[2].mxu0 }
 0x2f9   :  { %v1288_v35 = vpop.f32.mrb[3].mxu0  ;;  %1294 = vmatmul.mubr.msk.f32.vlgmr.msra.gmra.mrb[10].mxu1 %vm1055_vm1, %v1042_v34 }
 0x3cc   :  { %v1125_v37 = vpop.f32.mrb[10].mxu1 }
 0x3cd   :  { %v1126_v38 = vadd.f32 %v1162_v36, %v1125_v37  ;;  %v1295_v3 = vpop.f32.mrb[11].mxu1 }
 0x3cf   :  { %1130 = vst.msk [vmem:[%s1586_s10] sm:$0xff] %vm1129_vm10, %v1126_v38 }

</bundles_post_ra>
